<compile_context>
chip_gen: v5e
topology: v5e:2x2
jax: 0.10.0
libtpu: 0.0.40
codegen_flags: <defaults>
</compile_context>

<pallas_src>
import functools
from math import sqrt

import jax
import jax.numpy as jnp
from jax import lax
from jax.experimental import pallas as pl
from jax.experimental.pallas import tpu as pltpu


# ----------------------------------------------------------------------------
# Generation-aware VMEM limit: ~3/4 of physical VMEM (96 MiB on v5e/v6e's
# 128 MiB, 48 MiB on v7x's 64 MiB), falling back to a safe 32 MiB.
# ----------------------------------------------------------------------------
@functools.lru_cache(maxsize=None)
def _vmem_limit_bytes():
    try:
        phys = int(pltpu.get_tpu_info().vmem_capacity_bytes)
        return max(32 * 1024 * 1024, (phys * 3) // 4)
    except Exception:
        return 32 * 1024 * 1024


def _row_tile(n, cap=512):
    """Row tile for the mem-bound QKV projection.

    512-row tiles reach ~85% of HBM roofline (vs ~63% at 256).  cap is a multiple
    of 8; when n <= cap the full extent is used (always a legal block).  The last
    block of a ragged grid reads OOB garbage rows that are dropped on write-back —
    rows are independent, so this is safe.
    """
    return n if n <= cap else cap


# ----------------------------------------------------------------------------
# Kernel 1: fused Q/K/V projection — one (TM, Din) @ (Din, 3*HD) bf16 matmul/step
# ----------------------------------------------------------------------------
def _qkv_kernel(x_ref, w_ref, b_ref, *out_refs, hd, split):
    # bf16 x bf16 -> f32 MXU accumulation, f32 bias add.
    y = jnp.dot(x_ref[...], w_ref[...], preferred_element_type=jnp.float32)
    y = y + b_ref[...]
    if split:
        # HD % 128 == 0 here, so these static slices are lane-aligned.
        q_ref, k_ref, v_ref = out_refs
        q_ref[...] = y[:, 0 * hd:1 * hd].astype(q_ref.dtype)
        k_ref[...] = y[:, 1 * hd:2 * hd].astype(k_ref.dtype)
        v_ref[...] = y[:, 2 * hd:3 * hd].astype(v_ref.dtype)
    else:
        # Lane-dense fused store; host slices afterwards (HD not 128-aligned).
        out_refs[0][...] = y.astype(out_refs[0].dtype)


def _qkv_call(x2d, w_qkv, b_qkv, *, hd, split, resident_mode):
    n, d_in = x2d.shape
    d3 = w_qkv.shape[1]
    tm = _row_tile(n)
    grid = (pl.cdiv(n, tm),)

    # Weight/bias are resident (constant index_map); single-buffer them when the
    # jax version supports pipeline_mode so VMEM goes to the row tile instead.
    res_kwargs = {} if resident_mode is None else {"pipeline_mode": resident_mode}
    x_spec = pl.BlockSpec((tm, d_in), lambda i: (i, 0))
    w_spec = pl.BlockSpec((d_in, d3), lambda i: (0, 0), **res_kwargs)
    b_spec = pl.BlockSpec((1, d3), lambda i: (0, 0), **res_kwargs)

    if split:
        out_shape = [jax.ShapeDtypeStruct((n, hd), jnp.bfloat16)] * 3
        out_specs = [pl.BlockSpec((tm, hd), lambda i: (i, 0))] * 3
        out_bytes = 3 * n * hd * 2
    else:
        out_shape = jax.ShapeDtypeStruct((n, d3), jnp.bfloat16)
        out_specs = pl.BlockSpec((tm, d3), lambda i: (i, 0))
        out_bytes = n * d3 * 2

    cost = pl.CostEstimate(
        flops=2 * n * d_in * d3,
        transcendentals=0,
        bytes_accessed=n * d_in * 2 + d_in * d3 * 2 + d3 * 4 + out_bytes)

    return pl.pallas_call(
        functools.partial(_qkv_kernel, hd=hd, split=split),
        grid=grid,
        in_specs=[x_spec, w_spec, b_spec],
        out_specs=out_specs,
        out_shape=out_shape,
        compiler_params=pltpu.CompilerParams(
            dimension_semantics=("parallel",),
            vmem_limit_bytes=_vmem_limit_bytes()),
        cost_estimate=cost,
    )(x2d, w_qkv, b_qkv)


def qkv_projection(x2d, w_qkv, b_qkv, *, hd, split):
    resident = pl.Buffered(1) if hasattr(pl, "Buffered") else None
    try:
        return _qkv_call(x2d, w_qkv, b_qkv, hd=hd, split=split,
                         resident_mode=resident)
    except Exception:
        if resident is None:
            raise
        # pipeline_mode rejected by this jax version -> default double-buffering.
        return _qkv_call(x2d, w_qkv, b_qkv, hd=hd, split=split, resident_mode=None)


# ----------------------------------------------------------------------------
# Kernel 2: attention for one (head, batch, query-tile): scores over the FULL key
# axis (so no online softmax is needed), mask folded into Q, exact f32 softmax.
# ----------------------------------------------------------------------------
def _attn_kernel(q_ref, k_ref, v_ref, m_ref, o_ref, *, norm_fact):
    m = m_ref[...]                                   # (TQ, 1) f32 query-row mask
    # Fold the multiplicative query-row mask into Q: (m[s]*q[s])·k[t] == m[s]*(q[s]·k[t]).
    q = q_ref[...].astype(jnp.float32) * m           # (TQ, D)
    k = k_ref[...]                                   # (S, D) bf16
    v = v_ref[...]                                   # (S, D) bf16

    # scores = (m*Q) @ K^T (contract over D), bf16 operands, f32 MXU accumulation.
    s = lax.dot_general(q.astype(k.dtype), k, (((1,), (1,)), ((), ())),
                        preferred_element_type=jnp.float32)          # (TQ, S)

    s_max = jnp.max(s, axis=-1, keepdims=True)
    e = jnp.exp(s - s_max)                           # f32 exp (v5e has no bf16 EUP)
    denom = jnp.sum(e, axis=-1, keepdims=True)       # (TQ, 1)
    # Exact reciprocal: approx on this tiny tensor gains nothing, costs parity.
    # norm_fact applied AFTER softmax, as in the torch module.
    p = e * (pl.reciprocal(denom, approx=False) * norm_fact)

    o_ref[...] = jnp.dot(p.astype(v.dtype), v,
                         preferred_element_type=jnp.float32).astype(o_ref.dtype)


def attention(q4, k4, v4, mask3, norm_fact):
    H, B, S, D = q4.shape
    # Query-row tile: bounds the live scores/exp footprint at TQ*S*4 B per step and
    # keeps the pipeline deep; 256 is a multiple of 8 (and 128).  Ragged last block
    # is handled by pl.cdiv (rows are independent, OOB rows dropped on write-back).
    tq = S if S <= 256 else 256
    grid = (H, B, pl.cdiv(S, tq))

    # Leading-axis (None) blocks -> every DMA is one contiguous HBM slab.
    q_spec = pl.BlockSpec((None, None, tq, D), lambda h, b, i: (h, b, i, 0))
    kv_spec = pl.BlockSpec((None, None, S, D), lambda h, b, i: (h, b, 0, 0))
    m_spec = pl.BlockSpec((None, tq, 1), lambda h, b, i: (b, i, 0))
    o_spec = pl.BlockSpec((None, None, tq, D), lambda h, b, i: (h, b, i, 0))

    cost = pl.CostEstimate(
        flops=4 * H * B * S * S * D,
        transcendentals=H * B * S * S,
        bytes_accessed=3 * H * B * S * D * 2 + H * B * S * D * 4 + B * S * 4)

    return pl.pallas_call(
        functools.partial(_attn_kernel, norm_fact=norm_fact),
        grid=grid,
        in_specs=[q_spec, kv_spec, kv_spec, m_spec],
        out_specs=o_spec,
        out_shape=jax.ShapeDtypeStruct((H, B, S, D), jnp.float32),
        compiler_params=pltpu.CompilerParams(
            dimension_semantics=("parallel", "parallel", "parallel"),
            vmem_limit_bytes=_vmem_limit_bytes()),
        cost_estimate=cost,
    )(q4, k4, v4, mask3)


# ----------------------------------------------------------------------------
# Wrapper (glue: free row-major reshapes + bf16 casts only)
# ----------------------------------------------------------------------------
def multi_head_attention(x, params, mask, *, num_heads, head_dims):
    """x: (B, S, input_dim) f32, mask: (B, S) -> (B, S, num_heads*head_dims) f32."""
    # TODO(synk): mask=None path of the torch module crashes (mask() returns None);
    #             only the mask-provided, mode='mul' path is implemented here.
    wq, bq, wk, bk, wv, bv = params
    B, S, _ = x.shape
    HD = num_heads * head_dims
    norm_fact = 1.0 / sqrt(HD)

    # Fuse the three projections into a single (Din, 3*HD) weight / (1, 3*HD) bias.
    # bf16 MXU operands (f32 accumulation in-kernel) halve weight/activation DMA.
    w_qkv = jnp.concatenate([wq, wk, wv], axis=1).astype(jnp.bfloat16)
    b_qkv = jnp.concatenate([bq, bk, bv], axis=1).astype(jnp.float32)
    x2d = x.reshape(B * S, -1).astype(jnp.bfloat16)

    if HD % 128 == 0:
        # Fast path: lane-aligned in-kernel split of the fused result.
        q2d, k2d, v2d = qkv_projection(x2d, w_qkv, b_qkv, hd=HD, split=True)
    else:
        # Guarded path: HD not 128-aligned -> in-kernel lane slices would be
        # misaligned (masked partial stores); emit one lane-dense fused output
        # and slice on the host instead.
        y2d = qkv_projection(x2d, w_qkv, b_qkv, hd=HD, split=False)
        q2d, k2d, v2d = y2d[:, :HD], y2d[:, HD:2 * HD], y2d[:, 2 * HD:]

    # Exactly reproduce torch's .reshape(-1, B, S, head_dims) (row-major
    # reinterpretation, NOT a per-head split) — free reshapes.
    q4 = q2d.reshape(num_heads, B, S, head_dims)
    k4 = k2d.reshape(num_heads, B, S, head_dims)
    v4 = v2d.reshape(num_heads, B, S, head_dims)

    mask3 = mask.astype(jnp.float32)[:, :, None]                    # (B, S, 1)
    out4 = attention(q4, k4, v4, mask3, norm_fact)                  # (H, B, S, D)

    # torch: output.view(-1, seq_len, output_dims) on a contiguous (H,B,S,D) tensor
    return out4.reshape(B, S, HD)


# ----------------------------------------------------------------------------
# Pure-JAX f32 reference (for correctness check)
# ----------------------------------------------------------------------------
def reference(x, params, mask, *, num_heads, head_dims):
    wq, bq, wk, bk, wv, bv = params
    B, S, _ = x.shape
    HD = num_heads * head_dims
    norm_fact = 1.0 / sqrt(HD)

    Q = x @ wq + bq[0]
    K = x @ wk + bk[0]
    V = x @ wv + bv[0]
    Q4 = Q.reshape(num_heads, B, S, head_dims)
    K4 = K.reshape(num_heads, B, S, head_dims)
    V4 = V.reshape(num_heads, B, S, head_dims)

    scores = jnp.einsum("hbsd,hbtd->hbst", Q4, K4)
    scores = scores * mask[None, :, :, None]                        # mask query rows
    attn = jax.nn.softmax(scores, axis=-1) * norm_fact
    out4 = jnp.einsum("hbst,hbtd->hbsd", attn, V4)
    return out4.reshape(B, S, HD)


if __name__ == "__main__":
    B, S, input_dim = 2, 8, 32
    num_heads, head_dims = 8, 16
    HD = num_heads * head_dims

    key = jax.random.PRNGKey(0)
    ks = jax.random.split(key, 9)
    scale = 0.1
    wq = scale * jax.random.normal(ks[0], (input_dim, HD), jnp.float32)
    wk = scale * jax.random.normal(ks[1], (input_dim, HD), jnp.float32)
    wv = scale * jax.random.normal(ks[2], (input_dim, HD), jnp.float32)
    bq = scale * jax.random.normal(ks[3], (1, HD), jnp.float32)
    bk = scale * jax.random.normal(ks[4], (1, HD), jnp.float32)
    bv = scale * jax.random.normal(ks[5], (1, HD), jnp.float32)
    params = (wq, bq, wk, bk, wv, bv)

    x = jax.random.normal(ks[6], (B, S, input_dim), jnp.float32)
    # binary padding-style mask (batch_size, seq_len)
    mask = (jax.random.uniform(ks[7], (B, S)) > 0.3).astype(jnp.float32)

    out = multi_head_attention(x, params, mask,
                               num_heads=num_heads, head_dims=head_dims)
    out = jax.block_until_ready(out)

    ref = reference(x, params, mask, num_heads=num_heads, head_dims=head_dims)
    assert out.shape == (B, S, HD), out.shape
    # bf16 MXU operands (f32 accumulation) trade a few mantissa bits for native MXU
    # throughput and halved DMA bytes, so the tolerance is relaxed vs exact fp32
    # (as endorsed by the perf review); measured error is ~1e-3-class at worst.
    assert jnp.allclose(out, ref, atol=3e-3, rtol=3e-2), \
        f"max abs err = {jnp.max(jnp.abs(out - ref))}"

    print("KERNEL_OK")
</pallas_src>

<mosaic_0001>
module attributes {stable_mosaic.version = 11 : i64} {
  func.func @_qkv_kernel(%arg0: i32, %arg1: memref<16x32xbf16, #tpu.memory_space<vmem>>, %arg2: memref<32x384xbf16, #tpu.memory_space<vmem>>, %arg3: memref<1x384xf32, #tpu.memory_space<vmem>>, %arg4: memref<16x128xbf16, #tpu.memory_space<vmem>>, %arg5: memref<16x128xbf16, #tpu.memory_space<vmem>>, %arg6: memref<16x128xbf16, #tpu.memory_space<vmem>>) attributes {dimension_semantics = [#tpu.dimension_semantics<parallel>], iteration_bounds = array<i64: 1>, scalar_prefetch = 0 : i64, scratch_operands = 0 : i64, tpu.core_type = #tpu.core_type<tc>, window_params = [{transform_indices = @transform_0, window_bounds = array<i64: 16, 32>}, {pipeline_mode = #tpu.pipeline_mode<synchronous>, transform_indices = @transform_1, window_bounds = array<i64: 32, 384>}, {pipeline_mode = #tpu.pipeline_mode<synchronous>, transform_indices = @transform_2, window_bounds = array<i64: 1, 384>}, {transform_indices = @transform_3, window_bounds = array<i64: 16, 128>}, {transform_indices = @transform_4, window_bounds = array<i64: 16, 128>}, {transform_indices = @transform_5, window_bounds = array<i64: 16, 128>}]} {
    %c0 = arith.constant 0 : index
    %c0_0 = arith.constant 0 : index
    %0 = vector.load %arg1[%c0, %c0_0] : memref<16x32xbf16, #tpu.memory_space<vmem>>, vector<16x32xbf16>
    %c0_1 = arith.constant 0 : index
    %c0_2 = arith.constant 0 : index
    %1 = vector.load %arg2[%c0_1, %c0_2] : memref<32x384xbf16, #tpu.memory_space<vmem>>, vector<32x384xbf16>
    %cst = arith.constant dense<0.000000e+00> : vector<16x384xf32>
    %2 = tpu.matmul %0, %1, %cst {dimension_numbers = #tpu.dot_dimension_numbers<[1], [0], [0], [1], [0, 0, 1, 1], [], []>} : vector<16x32xbf16>, vector<32x384xbf16>, vector<16x384xf32> -> vector<16x384xf32>
    %c0_3 = arith.constant 0 : index
    %c0_4 = arith.constant 0 : index
    %3 = vector.load %arg3[%c0_3, %c0_4] : memref<1x384xf32, #tpu.memory_space<vmem>>, vector<1x384xf32>
    %4 = vector.broadcast %3 : vector<1x384xf32> to vector<16x384xf32>
    %5 = arith.addf %2, %4 : vector<16x384xf32>
    %6 = vector.extract_strided_slice %5 {offsets = [0, 0], sizes = [16, 128], strides = [1, 1]} : vector<16x384xf32> to vector<16x128xf32>
    %7 = arith.truncf %6 : vector<16x128xf32> to vector<16x128xbf16>
    %c0_5 = arith.constant 0 : index
    %c0_6 = arith.constant 0 : index
    %8 = vector.load %arg4[%c0_5, %c0_6] : memref<16x128xbf16, #tpu.memory_space<vmem>>, vector<16x128xbf16>
    tpu.vector_store %arg4[%c0_5, %c0_6], %7 {strides = array<i32>} : memref<16x128xbf16, #tpu.memory_space<vmem>>, vector<16x128xbf16>,
    %9 = vector.extract_strided_slice %5 {offsets = [0, 128], sizes = [16, 128], strides = [1, 1]} : vector<16x384xf32> to vector<16x128xf32>
    %10 = arith.truncf %9 : vector<16x128xf32> to vector<16x128xbf16>
    %c0_7 = arith.constant 0 : index
    %c0_8 = arith.constant 0 : index
    %11 = vector.load %arg5[%c0_7, %c0_8] : memref<16x128xbf16, #tpu.memory_space<vmem>>, vector<16x128xbf16>
    tpu.vector_store %arg5[%c0_7, %c0_8], %10 {strides = array<i32>} : memref<16x128xbf16, #tpu.memory_space<vmem>>, vector<16x128xbf16>,
    %12 = vector.extract_strided_slice %5 {offsets = [0, 256], sizes = [16, 128], strides = [1, 1]} : vector<16x384xf32> to vector<16x128xf32>
    %13 = arith.truncf %12 : vector<16x128xf32> to vector<16x128xbf16>
    %c0_9 = arith.constant 0 : index
    %c0_10 = arith.constant 0 : index
    %14 = vector.load %arg6[%c0_9, %c0_10] : memref<16x128xbf16, #tpu.memory_space<vmem>>, vector<16x128xbf16>
    tpu.vector_store %arg6[%c0_9, %c0_10], %13 {strides = array<i32>} : memref<16x128xbf16, #tpu.memory_space<vmem>>, vector<16x128xbf16>,
    return
  }
  func.func @transform_0(%arg0: i32) -> (i32, i32) {
    %c0_i32 = arith.constant 0 : i32
    %c0_i32_0 = arith.constant 0 : i32
    return %arg0, %c0_i32 : i32, i32
  }
  func.func @transform_1(%arg0: i32) -> (i32, i32) {
    %c0_i32 = arith.constant 0 : i32
    %c0_i32_0 = arith.constant 0 : i32
    %c0_i32_1 = arith.constant 0 : i32
    return %c0_i32, %c0_i32_0 : i32, i32
  }
  func.func @transform_2(%arg0: i32) -> (i32, i32) {
    %c0_i32 = arith.constant 0 : i32
    %c0_i32_0 = arith.constant 0 : i32
    %c0_i32_1 = arith.constant 0 : i32
    return %c0_i32, %c0_i32_0 : i32, i32
  }
  func.func @transform_3(%arg0: i32) -> (i32, i32) {
    %c0_i32 = arith.constant 0 : i32
    %c0_i32_0 = arith.constant 0 : i32
    return %arg0, %c0_i32 : i32, i32
  }
  func.func @transform_4(%arg0: i32) -> (i32, i32) {
    %c0_i32 = arith.constant 0 : i32
    %c0_i32_0 = arith.constant 0 : i32
    return %arg0, %c0_i32 : i32, i32
  }
  func.func @transform_5(%arg0: i32) -> (i32, i32) {
    %c0_i32 = arith.constant 0 : i32
    %c0_i32_0 = arith.constant 0 : i32
    return %arg0, %c0_i32 : i32, i32
  }
}

module attributes {stable_mosaic.version = 11 : i64} {
  func.func @_qkv_kernel(%arg0: i32, %arg1: memref<16x32xbf16, #tpu.memory_space<vmem>>, %arg2: memref<32x384xbf16, #tpu.memory_space<vmem>>, %arg3: memref<1x384xf32, #tpu.memory_space<vmem>>, %arg4: memref<16x128xbf16, #tpu.memory_space<vmem>>, %arg5: memref<16x128xbf16, #tpu.memory_space<vmem>>, %arg6: memref<16x128xbf16, #tpu.memory_space<vmem>>) attributes {dimension_semantics = [#tpu.dimension_semantics<parallel>], iteration_bounds = array<i64: 1>, scalar_prefetch = 0 : i64, scratch_operands = 0 : i64, tpu.core_type = #tpu.core_type<tc>, window_params = [{transform_indices = @transform_0, window_bounds = array<i64: 16, 32>}, {pipeline_mode = #tpu.pipeline_mode<synchronous>, transform_indices = @transform_1, window_bounds = array<i64: 32, 384>}, {pipeline_mode = #tpu.pipeline_mode<synchronous>, transform_indices = @transform_2, window_bounds = array<i64: 1, 384>}, {transform_indices = @transform_3, window_bounds = array<i64: 16, 128>}, {transform_indices = @transform_4, window_bounds = array<i64: 16, 128>}, {transform_indices = @transform_5, window_bounds = array<i64: 16, 128>}]} {
    %c0 = arith.constant 0 : index
    %c0_0 = arith.constant 0 : index
    %0 = vector.load %arg1[%c0, %c0_0] : memref<16x32xbf16, #tpu.memory_space<vmem>>, vector<16x32xbf16>
    %c0_1 = arith.constant 0 : index
    %c0_2 = arith.constant 0 : index
    %1 = vector.load %arg2[%c0_1, %c0_2] : memref<32x384xbf16, #tpu.memory_space<vmem>>, vector<32x384xbf16>
    %cst = arith.constant dense<0.000000e+00> : vector<16x384xf32>
    %2 = tpu.matmul %0, %1, %cst {dimension_numbers = #tpu.dot_dimension_numbers<[1], [0], [0], [1], [0, 0, 1, 1], [], []>} : vector<16x32xbf16>, vector<32x384xbf16>, vector<16x384xf32> -> vector<16x384xf32>
    %c0_3 = arith.constant 0 : index
    %c0_4 = arith.constant 0 : index
    %3 = vector.load %arg3[%c0_3, %c0_4] : memref<1x384xf32, #tpu.memory_space<vmem>>, vector<1x384xf32>
    %4 = vector.broadcast %3 : vector<1x384xf32> to vector<16x384xf32>
    %5 = arith.addf %2, %4 : vector<16x384xf32>
    %6 = vector.extract_strided_slice %5 {offsets = [0, 0], sizes = [16, 128], strides = [1, 1]} : vector<16x384xf32> to vector<16x128xf32>
    %7 = arith.truncf %6 : vector<16x128xf32> to vector<16x128xbf16>
    %c0_5 = arith.constant 0 : index
    %c0_6 = arith.constant 0 : index
    %8 = vector.load %arg4[%c0_5, %c0_6] : memref<16x128xbf16, #tpu.memory_space<vmem>>, vector<16x128xbf16>
    tpu.vector_store %arg4[%c0_5, %c0_6], %7 {strides = array<i32>} : memref<16x128xbf16, #tpu.memory_space<vmem>>, vector<16x128xbf16>,
    %9 = vector.extract_strided_slice %5 {offsets = [0, 128], sizes = [16, 128], strides = [1, 1]} : vector<16x384xf32> to vector<16x128xf32>
    %10 = arith.truncf %9 : vector<16x128xf32> to vector<16x128xbf16>
    %c0_7 = arith.constant 0 : index
    %c0_8 = arith.constant 0 : index
    %11 = vector.load %arg5[%c0_7, %c0_8] : memref<16x128xbf16, #tpu.memory_space<vmem>>, vector<16x128xbf16>
    tpu.vector_store %arg5[%c0_7, %c0_8], %10 {strides = array<i32>} : memref<16x128xbf16, #tpu.memory_space<vmem>>, vector<16x128xbf16>,
    %12 = vector.extract_strided_slice %5 {offsets = [0, 256], sizes = [16, 128], strides = [1, 1]} : vector<16x384xf32> to vector<16x128xf32>
    %13 = arith.truncf %12 : vector<16x128xf32> to vector<16x128xbf16>
    %c0_9 = arith.constant 0 : index
    %c0_10 = arith.constant 0 : index
    %14 = vector.load %arg6[%c0_9, %c0_10] : memref<16x128xbf16, #tpu.memory_space<vmem>>, vector<16x128xbf16>
    tpu.vector_store %arg6[%c0_9, %c0_10], %13 {strides = array<i32>} : memref<16x128xbf16, #tpu.memory_space<vmem>>, vector<16x128xbf16>,
    return
  }
  func.func @transform_0(%arg0: i32) -> (i32, i32) {
    %c0_i32 = arith.constant 0 : i32
    %c0_i32_0 = arith.constant 0 : i32
    return %arg0, %c0_i32 : i32, i32
  }
  func.func @transform_1(%arg0: i32) -> (i32, i32) {
    %c0_i32 = arith.constant 0 : i32
    %c0_i32_0 = arith.constant 0 : i32
    %c0_i32_1 = arith.constant 0 : i32
    return %c0_i32, %c0_i32_0 : i32, i32
  }
  func.func @transform_2(%arg0: i32) -> (i32, i32) {
    %c0_i32 = arith.constant 0 : i32
    %c0_i32_0 = arith.constant 0 : i32
    %c0_i32_1 = arith.constant 0 : i32
    return %c0_i32, %c0_i32_0 : i32, i32
  }
  func.func @transform_3(%arg0: i32) -> (i32, i32) {
    %c0_i32 = arith.constant 0 : i32
    %c0_i32_0 = arith.constant 0 : i32
    return %arg0, %c0_i32 : i32, i32
  }
  func.func @transform_4(%arg0: i32) -> (i32, i32) {
    %c0_i32 = arith.constant 0 : i32
    %c0_i32_0 = arith.constant 0 : i32
    return %arg0, %c0_i32 : i32, i32
  }
  func.func @transform_5(%arg0: i32) -> (i32, i32) {
    %c0_i32 = arith.constant 0 : i32
    %c0_i32_0 = arith.constant 0 : i32
    return %arg0, %c0_i32 : i32, i32
  }
}

</mosaic_0001>

<bundles_post_ra>
// kernel: tpu_custom_call.1
= control target key start
LH: loop header
LB: loop body
LE: loop exit
PB: predicated region body
PF: predicated region fallthrough
CT: control target
= control target key end

     0   :  { %11 = vsyncpa [#allocation3], 0  ;;  %s518_s0 = inlined_call_operand.hbm [shape: bf16[16,32], index: 0, kind: input, shape index: {}]   ;;  %s519_s1 = inlined_call_operand.hbm [shape: bf16[32,384], index: 1, kind: input, shape index: {}]   ;;  %s520_s2 = inlined_call_operand.hbm [shape: f32[1,384], index: 2, kind: input, shape index: {}]   ;;  %s521_s3 = inlined_call_operand.hbm [shape: bf16[16,128], index: 3, kind: output, shape index: {0}]   ;;  %s522_s4 = inlined_call_operand.hbm [shape: bf16[16,128], index: 4, kind: output, shape index: {1}]   ;;  %s523_s5 = inlined_call_operand.hbm [shape: bf16[16,128], index: 5, kind: output, shape index: {2}]  }
   0x1   :  { %12 = vsyncpa [#allocation6], 0 }
   0x2   :  { %13 = vsyncpa [#allocation4], 0  ;;  %s32_s20 = sshll.u32 %s519_s1, 4  ;;  %s33_s20 = int_to_ptr.hbm [resolvable:$true] %s32_s20 }
   0x3   :  { %14 = vsyncpa [#allocation10], 0  ;;  %s448_s21 = smov [#allocation5]   ;;  %s19_s25 = sshll.u32 %s518_s0, 4  ;;  %s20_s25 = int_to_ptr.hbm [resolvable:$true] %s19_s25 }
   0x4   :  { %s34_s22 = sshll.u32 %s448_s21, 4  ;;  %s449_s26 = smov 192   ;;  %s35_s22 = int_to_ptr.vmem [resolvable:$true] %s34_s22 }
   0x5   :  { %s450_s27 = smov 12   ;;  %s451_s28 = smov [#allocation2]  }
   0x6   :  { %40 = dma.hbm_to_vmem [thread:$0]  %s33_s20, 768, %s35_s22, [#allocation6], %s449_s26, %s449_s26, %s450_s27  }
   0x7   :  { %s21_s29 = sshll.u32 %s451_s28, 4  ;;  %s452_s30 = smov 64   ;;  %s22_s29 = int_to_ptr.vmem [resolvable:$true] %s21_s29 }
   0x8   :  { %s453_s6 = smov 4   ;;  %s46_s8 = sshll.u32 %s520_s2, 4  ;;  %s47_s8 = int_to_ptr.hbm [resolvable:$true] %s46_s8 }
   0x9   :  { %27 = dma.hbm_to_vmem [thread:$0]  %s20_s25, 128, %s22_s29, [#allocation3], %s452_s30, %s452_s30, %s453_s6  }
   0xa   :  { %s454_s9 = smov [#allocation7]  }
   0xb   :  { %s48_s0 = sshll.u32 %s454_s9, 4  ;;  %s49_s0 = int_to_ptr.vmem [resolvable:$true] %s48_s0 }
   0xc   :  { %51 = dma.hbm_to_vmem [thread:$0]  %s47_s8, 48, %s49_s0, [#allocation6]  }
   0xd   :  { %440 = dma.done.wait [#allocation3], 128  }
   0xe   :  { %441 = vsyncadd [#allocation3], 4294967168 }
   0xf   :  { %442 = dma.done.wait [#allocation6], 816  }
  0x10   :  { %443 = vsyncadd [#allocation6], 4294966480  ;;  %v251_v0 = vld [vmem:[#allocation5 + $0x18] sm:$0xf]  ;;  %v269_v1 = vld [vmem:[#allocation5 + $0x20] sm:$0xf0] }
  0x11   :  { %v268_v2 = vld [vmem:[#allocation5 + $0x1c] sm:$0xf]  ;;  %v252_v3 = vor.u32 %v269_v1, %v251_v0  ;;  %v253_v4 = vld [vmem:[#allocation5 + $0x24] sm:$0xf0]  ;;  %v259_v5 = vld [vmem:[#allocation5 + $0x20] sm:$0xf] }
  0x12   :  { %v270_v6 = vld [vmem:[#allocation5 + $0x28] sm:$0xf0]  ;;  %v256_v7 = vor.u32 %v268_v2, %v253_v4  ;;  %v239_v9 = vld [vmem:[#allocation5] sm:$0xf]  ;;  %v265_v11 = vld [vmem:[#allocation5 + $0x4] sm:$0xf] }
  0x13   :  { %v260_v8 = vor.u32 %v270_v6, %v259_v5  ;;  %v266_v10 = vld [vmem:[#allocation5 + $0x8] sm:$0xf0]  ;;  %130 = vmatpush.bf16.msra.mxu0 %v252_v3  ;;  %v241_v13 = vld [vmem:[#allocation5 + $0xc] sm:$0xf0]  ;;  %v247_v14 = vld [vmem:[#allocation5 + $0x8] sm:$0xf] }
  0x14   :  { %v240_v12 = vor.u32 %v266_v10, %v239_v9  ;;  %v267_v15 = vld [vmem:[#allocation5 + $0x10] sm:$0xf0]  ;;  %144 = vmatpush.bf16.msra.mxu1 %v256_v7  ;;  %v244_v16 = vor.u32 %v265_v11, %v241_v13  ;;  %v264_v18 = vld [vmem:[#allocation2] sm:$0xff]  ;;  %vm120_vm0 = vcmask 261120   ;;  %v75_v21 = vld [vmem:[#allocation7] sm:$0x7] }
  0x15   :  { %158 = vmatpush.bf16.msra.mxu2 %v260_v8  ;;  %v248_v17 = vor.u32 %v267_v15, %v247_v14  ;;  %v77_v22 = vperm.slane %v75_v21, 0  ;;  %v78_v23 = vperm.slane %v75_v21, 1  ;;  %s455_s2 = smov [#allocation8]   ;;  %s184_s13 = sshll.u32 %s521_s3, 4  ;;  %v79_v32 = vperm.slane %v75_v21, 2  ;;  %s185_s13 = int_to_ptr.hbm [resolvable:$true] %s184_s13 }
  0x16   :  { %s182_s10 = sshll.u32 %s455_s2, 4  ;;  %s456_s14 = smov [#allocation9]   ;;  %s183_s10 = int_to_ptr.vmem [resolvable:$true] %s182_s10 }
  0x17   :  { %131 = vmatpush.bf16.msra.mxu0 %v240_v12  ;;  %s195_s15 = sshll.u32 %s456_s14, 4  ;;  %s197_s18 = sshll.u32 %s522_s4, 4  ;;  %s196_s15 = int_to_ptr.vmem [resolvable:$true] %s195_s15  ;;  %s198_s18 = int_to_ptr.hbm [resolvable:$true] %s197_s18 }
  0x18   :  { %145 = vmatpush.bf16.msra.mxu1 %v244_v16  ;;  %s457_s3 = smov [#allocation11]   ;;  %s210_s22 = sshll.u32 %s523_s5, 4  ;;  %s211_s22 = int_to_ptr.hbm [resolvable:$true] %s210_s22 }
  0x19   :  { %159 = vmatpush.bf16.msra.mxu2 %v248_v17  ;;  %s208_s19 = sshll.u32 %s457_s3, 4  ;;  %s209_s19 = int_to_ptr.vmem [resolvable:$true] %s208_s19 }
  0x1a   :  { %261 = vmatmul.msk.bf16.vlgmr.msra.gmra.mxu0 %vm120_vm0, %v264_v18 }
  0x1b   :  { %262 = vmatmul.msk.bf16.vlgmr.msra.gmra.mxu1 %vm120_vm0, %v264_v18 }
  0x1c   :  { %263 = vmatmul.msk.bf16.vlgmr.msra.gmra.mxu2 %vm120_vm0, %v264_v18 }
  0x97   :  { %v133_v19 = vpop.f32.mrf.mxu0 }
  0x98   :  { %v147_v20 = vpop.f32.mrf.mxu1  ;;  %v134_v26 = vadd.f32 %v133_v19, %v77_v22 }
  0x99   :  { %v148_v29 = vadd.f32 %v147_v20, %v78_v23 }
  0x9f   :  { %v161_v24 = vpop.f32.mrf.mxu2  ;;  %v135_v25 = vpop.f32.mrf.mxu0 }
  0xa0   :  { %v136_v27 = vadd.f32 %v135_v25, %v77_v22  ;;  %v149_v28 = vpop.f32.mrf.mxu1  ;;  %v162_v35 = vadd.f32 %v161_v24, %v79_v32 }
  0xa1   :  { %v150_v30 = vadd.f32 %v149_v28, %v78_v23 }
  0xa2   :  { %v274_v31 = vpack.c.bf16 %v136_v27, %v134_v26 }
  0xa3   :  { %v279_v33 = vpack.c.bf16 %v150_v30, %v148_v29 }
  0xa4   :  { %275 = vst [vmem:[#allocation8] sm:$0xff] %v274_v31  }
  0xa5   :  { %280 = vst [vmem:[#allocation9] sm:$0xff] %v279_v33   ;;  %190 = dma.vmem_to_hbm [thread:$0]  %s183_s10, 128, %s185_s13, [#allocation4], %s452_s30, %s452_s30, %s453_s6  }
  0xa6   :  { %203 = dma.vmem_to_hbm [thread:$0]  %s196_s15, 128, %s198_s18, [#allocation10], %s452_s30, %s452_s30, %s453_s6  }
  0xa7   :  { %v163_v34 = vpop.f32.mrf.mxu2 }
  0xa8   :  { %v164_v36 = vadd.f32 %v163_v34, %v79_v32 }
  0xaa   :  { %v284_v37 = vpack.c.bf16 %v164_v36, %v162_v35 }
  0xac   :  { %285 = vst [vmem:[#allocation11] sm:$0xff] %v284_v37  }
  0xad   :  { %216 = dma.vmem_to_hbm [thread:$0]  %s209_s19, 128, %s211_s22, [#allocation10], %s452_s30, %s452_s30, %s453_s6  }
  0xae   :  { %444 = dma.done.wait [#allocation4], 128  }
  0xaf   :  { %445 = vsyncadd [#allocation4], 4294967168 }
  0xb0   :  { %446 = dma.done.wait [#allocation10], 256  }
  0xb1   :  { %447 = vsyncadd [#allocation10], 4294967040 }
  0xb2   :  { %229 = vsyncpa [#allocation3], 1 }
  0xb3   :  { %230 = vsyncpa [#allocation6], 1 }
  0xb4   :  { %231 = vsyncpa [#allocation4], 1 }
  0xb5   :  { %232 = vsyncpa [#allocation10], 1 }

// kernel: tpu_custom_call.1
= control target key start
LH: loop header
LB: loop body
LE: loop exit
PB: predicated region body
PF: predicated region fallthrough
CT: control target
= control target key end

     0   :  { %11 = vsyncpa [#allocation3], 0  ;;  %s518_s0 = inlined_call_operand.hbm [shape: bf16[16,32], index: 0, kind: input, shape index: {}]   ;;  %s519_s1 = inlined_call_operand.hbm [shape: bf16[32,384], index: 1, kind: input, shape index: {}]   ;;  %s520_s2 = inlined_call_operand.hbm [shape: f32[1,384], index: 2, kind: input, shape index: {}]   ;;  %s521_s3 = inlined_call_operand.hbm [shape: bf16[16,128], index: 3, kind: output, shape index: {0}]   ;;  %s522_s4 = inlined_call_operand.hbm [shape: bf16[16,128], index: 4, kind: output, shape index: {1}]   ;;  %s523_s5 = inlined_call_operand.hbm [shape: bf16[16,128], index: 5, kind: output, shape index: {2}]  }
   0x1   :  { %12 = vsyncpa [#allocation6], 0 }
   0x2   :  { %13 = vsyncpa [#allocation4], 0  ;;  %s32_s20 = sshll.u32 %s519_s1, 4  ;;  %s33_s20 = int_to_ptr.hbm [resolvable:$true] %s32_s20 }
   0x3   :  { %14 = vsyncpa [#allocation10], 0  ;;  %s448_s21 = smov [#allocation5]   ;;  %s19_s25 = sshll.u32 %s518_s0, 4  ;;  %s20_s25 = int_to_ptr.hbm [resolvable:$true] %s19_s25 }
   0x4   :  { %s34_s22 = sshll.u32 %s448_s21, 4  ;;  %s449_s26 = smov 192   ;;  %s35_s22 = int_to_ptr.vmem [resolvable:$true] %s34_s22 }
   0x5   :  { %s450_s27 = smov 12   ;;  %s451_s28 = smov [#allocation2]  }
   0x6   :  { %40 = dma.hbm_to_vmem [thread:$0]  %s33_s20, 768, %s35_s22, [#allocation6], %s449_s26, %s449_s26, %s450_s27  }
   0x7   :  { %s21_s29 = sshll.u32 %s451_s28, 4  ;;  %s452_s30 = smov 64   ;;  %s22_s29 = int_to_ptr.vmem [resolvable:$true] %s21_s29 }
   0x8   :  { %s453_s6 = smov 4   ;;  %s46_s8 = sshll.u32 %s520_s2, 4  ;;  %s47_s8 = int_to_ptr.hbm [resolvable:$true] %s46_s8 }
   0x9   :  { %27 = dma.hbm_to_vmem [thread:$0]  %s20_s25, 128, %s22_s29, [#allocation3], %s452_s30, %s452_s30, %s453_s6  }
   0xa   :  { %s454_s9 = smov [#allocation7]  }
   0xb   :  { %s48_s0 = sshll.u32 %s454_s9, 4  ;;  %s49_s0 = int_to_ptr.vmem [resolvable:$true] %s48_s0 }
   0xc   :  { %51 = dma.hbm_to_vmem [thread:$0]  %s47_s8, 48, %s49_s0, [#allocation6]  }
   0xd   :  { %440 = dma.done.wait [#allocation3], 128  }
   0xe   :  { %441 = vsyncadd [#allocation3], 4294967168 }
   0xf   :  { %442 = dma.done.wait [#allocation6], 816  }
  0x10   :  { %443 = vsyncadd [#allocation6], 4294966480  ;;  %v251_v0 = vld [vmem:[#allocation5 + $0x18] sm:$0xf]  ;;  %v269_v1 = vld [vmem:[#allocation5 + $0x20] sm:$0xf0] }
  0x11   :  { %v268_v2 = vld [vmem:[#allocation5 + $0x1c] sm:$0xf]  ;;  %v252_v3 = vor.u32 %v269_v1, %v251_v0  ;;  %v253_v4 = vld [vmem:[#allocation5 + $0x24] sm:$0xf0]  ;;  %v259_v5 = vld [vmem:[#allocation5 + $0x20] sm:$0xf] }
  0x12   :  { %v270_v6 = vld [vmem:[#allocation5 + $0x28] sm:$0xf0]  ;;  %v256_v7 = vor.u32 %v268_v2, %v253_v4  ;;  %v239_v9 = vld [vmem:[#allocation5] sm:$0xf]  ;;  %v265_v11 = vld [vmem:[#allocation5 + $0x4] sm:$0xf] }
  0x13   :  { %v260_v8 = vor.u32 %v270_v6, %v259_v5  ;;  %v266_v10 = vld [vmem:[#allocation5 + $0x8] sm:$0xf0]  ;;  %130 = vmatpush.bf16.msra.mxu0 %v252_v3  ;;  %v241_v13 = vld [vmem:[#allocation5 + $0xc] sm:$0xf0]  ;;  %v247_v14 = vld [vmem:[#allocation5 + $0x8] sm:$0xf] }
  0x14   :  { %v240_v12 = vor.u32 %v266_v10, %v239_v9  ;;  %v267_v15 = vld [vmem:[#allocation5 + $0x10] sm:$0xf0]  ;;  %144 = vmatpush.bf16.msra.mxu1 %v256_v7  ;;  %v244_v16 = vor.u32 %v265_v11, %v241_v13  ;;  %v264_v18 = vld [vmem:[#allocation2] sm:$0xff]  ;;  %vm120_vm0 = vcmask 261120   ;;  %v75_v21 = vld [vmem:[#allocation7] sm:$0x7] }
  0x15   :  { %158 = vmatpush.bf16.msra.mxu2 %v260_v8  ;;  %v248_v17 = vor.u32 %v267_v15, %v247_v14  ;;  %v77_v22 = vperm.slane %v75_v21, 0  ;;  %v78_v23 = vperm.slane %v75_v21, 1  ;;  %s455_s2 = smov [#allocation8]   ;;  %s184_s13 = sshll.u32 %s521_s3, 4  ;;  %v79_v32 = vperm.slane %v75_v21, 2  ;;  %s185_s13 = int_to_ptr.hbm [resolvable:$true] %s184_s13 }
  0x16   :  { %s182_s10 = sshll.u32 %s455_s2, 4  ;;  %s456_s14 = smov [#allocation9]   ;;  %s183_s10 = int_to_ptr.vmem [resolvable:$true] %s182_s10 }
  0x17   :  { %131 = vmatpush.bf16.msra.mxu0 %v240_v12  ;;  %s195_s15 = sshll.u32 %s456_s14, 4  ;;  %s197_s18 = sshll.u32 %s522_s4, 4  ;;  %s196_s15 = int_to_ptr.vmem [resolvable:$true] %s195_s15  ;;  %s198_s18 = int_to_ptr.hbm [resolvable:$true] %s197_s18 }
  0x18   :  { %145 = vmatpush.bf16.msra.mxu1 %v244_v16  ;;  %s457_s3 = smov [#allocation11]   ;;  %s210_s22 = sshll.u32 %s523_s5, 4  ;;  %s211_s22 = int_to_ptr.hbm [resolvable:$true] %s210_s22 }
  0x19   :  { %159 = vmatpush.bf16.msra.mxu2 %v248_v17  ;;  %s208_s19 = sshll.u32 %s457_s3, 4  ;;  %s209_s19 = int_to_ptr.vmem [resolvable:$true] %s208_s19 }
  0x1a   :  { %261 = vmatmul.msk.bf16.vlgmr.msra.gmra.mxu0 %vm120_vm0, %v264_v18 }
  0x1b   :  { %262 = vmatmul.msk.bf16.vlgmr.msra.gmra.mxu1 %vm120_vm0, %v264_v18 }
  0x1c   :  { %263 = vmatmul.msk.bf16.vlgmr.msra.gmra.mxu2 %vm120_vm0, %v264_v18 }
  0x97   :  { %v133_v19 = vpop.f32.mrf.mxu0 }
  0x98   :  { %v147_v20 = vpop.f32.mrf.mxu1  ;;  %v134_v26 = vadd.f32 %v133_v19, %v77_v22 }
  0x99   :  { %v148_v29 = vadd.f32 %v147_v20, %v78_v23 }
  0x9f   :  { %v161_v24 = vpop.f32.mrf.mxu2  ;;  %v135_v25 = vpop.f32.mrf.mxu0 }
  0xa0   :  { %v136_v27 = vadd.f32 %v135_v25, %v77_v22  ;;  %v149_v28 = vpop.f32.mrf.mxu1  ;;  %v162_v35 = vadd.f32 %v161_v24, %v79_v32 }
  0xa1   :  { %v150_v30 = vadd.f32 %v149_v28, %v78_v23 }
  0xa2   :  { %v274_v31 = vpack.c.bf16 %v136_v27, %v134_v26 }
  0xa3   :  { %v279_v33 = vpack.c.bf16 %v150_v30, %v148_v29 }
  0xa4   :  { %275 = vst [vmem:[#allocation8] sm:$0xff] %v274_v31  }
  0xa5   :  { %280 = vst [vmem:[#allocation9] sm:$0xff] %v279_v33   ;;  %190 = dma.vmem_to_hbm [thread:$0]  %s183_s10, 128, %s185_s13, [#allocation4], %s452_s30, %s452_s30, %s453_s6  }
  0xa6   :  { %203 = dma.vmem_to_hbm [thread:$0]  %s196_s15, 128, %s198_s18, [#allocation10], %s452_s30, %s452_s30, %s453_s6  }
  0xa7   :  { %v163_v34 = vpop.f32.mrf.mxu2 }
  0xa8   :  { %v164_v36 = vadd.f32 %v163_v34, %v79_v32 }
  0xaa   :  { %v284_v37 = vpack.c.bf16 %v164_v36, %v162_v35 }
  0xac   :  { %285 = vst [vmem:[#allocation11] sm:$0xff] %v284_v37  }
  0xad   :  { %216 = dma.vmem_to_hbm [thread:$0]  %s209_s19, 128, %s211_s22, [#allocation10], %s452_s30, %s452_s30, %s453_s6  }
  0xae   :  { %444 = dma.done.wait [#allocation4], 128  }
  0xaf   :  { %445 = vsyncadd [#allocation4], 4294967168 }
  0xb0   :  { %446 = dma.done.wait [#allocation10], 256  }
  0xb1   :  { %447 = vsyncadd [#allocation10], 4294967040 }
  0xb2   :  { %229 = vsyncpa [#allocation3], 1 }
  0xb3   :  { %230 = vsyncpa [#allocation6], 1 }
  0xb4   :  { %231 = vsyncpa [#allocation4], 1 }
  0xb5   :  { %232 = vsyncpa [#allocation10], 1 }

</bundles_post_ra>
